<compile_context>
chip_gen: v7x
topology: tpu7x:2x2x1
jax: 0.10.0
libtpu: 0.0.40
codegen_flags: <defaults>
</compile_context>

<pallas_src>
import jax
import jax.numpy as jnp
from jax.experimental import pallas as pl
from jax.experimental.pallas import tpu as pltpu


def _round_up(x, m):
    return ((x + m - 1) // m) * m


def _monotonic_kernel(x_ref, w_ref, b_ref, o_ref, acc_ref):
    """One (i, j, k) grid step.

    x_ref:   (tm, tk)  activation tile
    w_ref:   (tn, tk)  weight tile (PyTorch (out, in) layout)
    b_ref:   (1, tn)   bias tile
    o_ref:   (tm, tn)  output tile (written once, in the k==last finalize)
    acc_ref: (tm, tn)  f32 VMEM accumulator, resident across the K axis
    """
    k = pl.program_id(2)

    @pl.when(k == 0)
    def _init():
        acc_ref[...] = jnp.zeros_like(acc_ref)

    # relu on the weight tile is free VPU work under MXU slack; contracting the
    # last (lane) dims of both operands feeds the MXU without an XLU transpose.
    w_pos = jnp.maximum(w_ref[...], 0.0)
    acc_ref[...] += jax.lax.dot_general(
        x_ref[...],
        w_pos,
        dimension_numbers=(((1,), (1,)), ((), ())),
        preferred_element_type=jnp.float32,
    )

    @pl.when(k == pl.num_programs(2) - 1)
    def _finalize():
        o_ref[...] = (acc_ref[...] + b_ref[...]).astype(o_ref.dtype)


def monotonic_layer(x, weight, bias, *, tm_cap=256, tn_cap=256, tk_cap=512):
    """y = x @ relu(weight).T + bias  (PyTorch MonotonicLayer.forward)

    x:      (batch, in_features)
    weight: (out_features, in_features)
    bias:   (out_features,)
    """
    batch, in_features = x.shape
    out_features = weight.shape[0]
    out_dtype = x.dtype

    # Lane-dense tile sizes, capped so (2 x-bufs + 2 w-bufs + 2 out-bufs + acc)
    # in f32 stays far under the 32 MiB scoped VMEM budget on every generation.
    tm = min(tm_cap, _round_up(batch, 8))
    tn = min(tn_cap, _round_up(out_features, 128))
    tk = min(tk_cap, _round_up(in_features, 128))

    m_pad = _round_up(batch, tm)
    n_pad = _round_up(out_features, tn)
    k_pad = _round_up(in_features, tk)

    # Zero padding is exact: relu(0)=0 contributes nothing along K, and extra
    # M rows / N columns are sliced off after the call.
    x_p = jnp.pad(x, ((0, m_pad - batch), (0, k_pad - in_features)))
    w_p = jnp.pad(weight, ((0, n_pad - out_features), (0, k_pad - in_features)))
    b_p = jnp.pad(bias, (0, n_pad - out_features)).reshape(1, n_pad)

    grid = (m_pad // tm, n_pad // tn, k_pad // tk)

    cost = pl.CostEstimate(
        flops=2 * m_pad * n_pad * k_pad,
        transcendentals=0,
        bytes_accessed=4 * (m_pad * k_pad + n_pad * k_pad + m_pad * n_pad + n_pad),
    )

    out_p = pl.pallas_call(
        _monotonic_kernel,
        out_shape=jax.ShapeDtypeStruct((m_pad, n_pad), out_dtype),
        grid_spec=pltpu.PrefetchScalarGridSpec(
            num_scalar_prefetch=0,
            grid=grid,
            in_specs=[
                pl.BlockSpec((tm, tk), lambda i, j, k: (i, k)),   # x
                pl.BlockSpec((tn, tk), lambda i, j, k: (j, k)),   # weight
                pl.BlockSpec((1, tn), lambda i, j, k: (0, j)),    # bias
            ],
            out_specs=pl.BlockSpec((tm, tn), lambda i, j, k: (i, j)),
            scratch_shapes=[pltpu.VMEM((tm, tn), jnp.float32)],
        ),
        compiler_params=pltpu.CompilerParams(
            # M / N shard across v7x's 2 TensorCores; K is the reduction axis.
            dimension_semantics=("parallel", "parallel", "arbitrary"),
            vmem_limit_bytes=32 * 1024 * 1024,
        ),
        cost_estimate=cost,
    )(x_p, w_p, b_p)

    return out_p[:batch, :out_features]


if __name__ == "__main__":
    key = jax.random.PRNGKey(0)
    kx, kw, k2x, k2w = jax.random.split(key, 4)

    def ref(x, w, b):
        return x @ jnp.maximum(w, 0.0).T + b

    # 1) Toy shape matching the module (weight ~ randn*0.1, bias = zeros).
    #    Exercises the padding path; padded N tile keeps output stores lane-dense.
    batch, in_features, out_features = 8, 32, 16
    x = jax.random.normal(kx, (batch, in_features), dtype=jnp.float32)
    weight = jax.random.normal(kw, (out_features, in_features), dtype=jnp.float32) * 0.1
    bias = jnp.zeros((out_features,), dtype=jnp.float32)

    y = jax.block_until_ready(monotonic_layer(x, weight, bias))
    assert y.shape == (batch, out_features)
    assert jnp.allclose(y, ref(x, weight, bias), atol=1e-5, rtol=1e-5), "small-shape mismatch"

    # 2) A shape that exercises the full (M, N, K) tiled grid, the K-axis
    #    accumulator, and a non-zero bias in the finalize branch.
    b2, i2, o2 = 512, 640, 384
    x2 = jax.random.normal(k2x, (b2, i2), dtype=jnp.float32)
    w2 = jax.random.normal(k2w, (o2, i2), dtype=jnp.float32) * 0.1
    bias2 = jnp.arange(o2, dtype=jnp.float32) * 1e-3
    y2 = jax.block_until_ready(monotonic_layer(x2, w2, bias2))
    assert y2.shape == (b2, o2)
    assert jnp.allclose(y2, ref(x2, w2, bias2), atol=1e-3, rtol=1e-3), "tiled-shape mismatch"

    print("KERNEL_OK")
</pallas_src>

<mosaic_0001>
module attributes {stable_mosaic.version = 11 : i64} {
  func.func @_monotonic_kernel(%arg0: i32, %arg1: i32, %arg2: i32, %arg3: memref<8x128xf32, #tpu.memory_space<vmem>>, %arg4: memref<128x128xf32, #tpu.memory_space<vmem>>, %arg5: memref<1x128xf32, #tpu.memory_space<vmem>>, %arg6: memref<8x128xf32, #tpu.memory_space<vmem>>, %arg7: memref<8x128xf32, #tpu.memory_space<vmem>>) attributes {dimension_semantics = [#tpu.dimension_semantics<parallel>, #tpu.dimension_semantics<parallel>, #tpu.dimension_semantics<arbitrary>], iteration_bounds = array<i64: 1, 1, 1>, scalar_prefetch = 0 : i64, scratch_operands = 1 : i64, tpu.core_type = #tpu.core_type<tc>, window_params = [{transform_indices = @transform_0, window_bounds = array<i64: 8, 128>}, {transform_indices = @transform_1, window_bounds = array<i64: 128, 128>}, {transform_indices = @transform_2, window_bounds = array<i64: 1, 128>}, {transform_indices = @transform_3, window_bounds = array<i64: 8, 128>}]} {
    %c0_i32 = arith.constant 0 : i32
    %0 = arith.cmpi eq, %arg2, %c0_i32 : i32
    %1 = arith.extui %0 : i1 to i32
    %c0_i32_0 = arith.constant 0 : i32
    %2 = arith.cmpi ne, %1, %c0_i32_0 : i32
    scf.if %2 {
      %cst_11 = arith.constant 0.000000e+00 : f32
      %14 = vector.broadcast %cst_11 : f32 to vector<8x128xf32>
      %c0_12 = arith.constant 0 : index
      %c0_13 = arith.constant 0 : index
      %15 = vector.load %arg7[%c0_12, %c0_13] : memref<8x128xf32, #tpu.memory_space<vmem>>, vector<8x128xf32>
      tpu.vector_store %arg7[%c0_12, %c0_13], %14 {strides = array<i32>} : memref<8x128xf32, #tpu.memory_space<vmem>>, vector<8x128xf32>,
    } else {
    }
    %c0 = arith.constant 0 : index
    %c0_1 = arith.constant 0 : index
    %3 = vector.load %arg4[%c0, %c0_1] : memref<128x128xf32, #tpu.memory_space<vmem>>, vector<128x128xf32>
    %cst = arith.constant 0.000000e+00 : f32
    %4 = vector.broadcast %cst : f32 to vector<128x128xf32>
    %5 = arith.maximumf %3, %4 : vector<128x128xf32>
    %c0_2 = arith.constant 0 : index
    %c0_3 = arith.constant 0 : index
    %6 = vector.load %arg7[%c0_2, %c0_3] : memref<8x128xf32, #tpu.memory_space<vmem>>, vector<8x128xf32>
    %c0_4 = arith.constant 0 : index
    %c0_5 = arith.constant 0 : index
    %7 = vector.load %arg3[%c0_4, %c0_5] : memref<8x128xf32, #tpu.memory_space<vmem>>, vector<8x128xf32>
    %cst_6 = arith.constant dense<0.000000e+00> : vector<8x128xf32>
    %8 = tpu.matmul %7, %5, %cst_6 {dimension_numbers = #tpu.dot_dimension_numbers<[1], [1], [0], [0], [0, 0, 1, 0], [], []>} : vector<8x128xf32>, vector<128x128xf32>, vector<8x128xf32> -> vector<8x128xf32>
    %9 = arith.addf %6, %8 : vector<8x128xf32>
    %c0_7 = arith.constant 0 : index
    %c0_8 = arith.constant 0 : index
    %10 = vector.load %arg7[%c0_7, %c0_8] : memref<8x128xf32, #tpu.memory_space<vmem>>, vector<8x128xf32>
    tpu.vector_store %arg7[%c0_7, %c0_8], %9 {strides = array<i32>} : memref<8x128xf32, #tpu.memory_space<vmem>>, vector<8x128xf32>,
    %c0_i32_9 = arith.constant 0 : i32
    %11 = arith.cmpi eq, %arg2, %c0_i32_9 : i32
    %12 = arith.extui %11 : i1 to i32
    %c0_i32_10 = arith.constant 0 : i32
    %13 = arith.cmpi ne, %12, %c0_i32_10 : i32
    scf.if %13 {
      %c0_11 = arith.constant 0 : index
      %c0_12 = arith.constant 0 : index
      %14 = vector.load %arg7[%c0_11, %c0_12] : memref<8x128xf32, #tpu.memory_space<vmem>>, vector<8x128xf32>
      %c0_13 = arith.constant 0 : index
      %c0_14 = arith.constant 0 : index
      %15 = vector.load %arg5[%c0_13, %c0_14] : memref<1x128xf32, #tpu.memory_space<vmem>>, vector<1x128xf32>
      %16 = vector.broadcast %15 : vector<1x128xf32> to vector<8x128xf32>
      %17 = arith.addf %14, %16 : vector<8x128xf32>
      %c0_15 = arith.constant 0 : index
      %c0_16 = arith.constant 0 : index
      %18 = vector.load %arg6[%c0_15, %c0_16] : memref<8x128xf32, #tpu.memory_space<vmem>>, vector<8x128xf32>
      tpu.vector_store %arg6[%c0_15, %c0_16], %17 {strides = array<i32>} : memref<8x128xf32, #tpu.memory_space<vmem>>, vector<8x128xf32>,
    } else {
    }
    return
  }
  func.func @transform_0(%arg0: i32, %arg1: i32, %arg2: i32) -> (i32, i32) {
    %c0_i32 = arith.constant 0 : i32
    return %arg0, %arg2 : i32, i32
  }
  func.func @transform_1(%arg0: i32, %arg1: i32, %arg2: i32) -> (i32, i32) {
    %c0_i32 = arith.constant 0 : i32
    return %arg1, %arg2 : i32, i32
  }
  func.func @transform_2(%arg0: i32, %arg1: i32, %arg2: i32) -> (i32, i32) {
    %c0_i32 = arith.constant 0 : i32
    %c0_i32_0 = arith.constant 0 : i32
    return %c0_i32, %arg1 : i32, i32
  }
  func.func @transform_3(%arg0: i32, %arg1: i32, %arg2: i32) -> (i32, i32) {
    %c0_i32 = arith.constant 0 : i32
    return %arg0, %arg1 : i32, i32
  }
}

</mosaic_0001>

<bundles_post_ra>
// kernel: tpu_custom_call.1
= control target key start
LH: loop header
LB: loop body
LE: loop exit
PB: predicated region body
PF: predicated region fallthrough
CT: control target
= control target key end

     0   :  { %8 = vsyncpa [#allocation4], 0  ;;  %s412_s0 = inlined_call_operand.hbm [shape: f32[8,128], index: 0, kind: input, shape index: {}]   ;;  %s413_s1 = inlined_call_operand.hbm [shape: f32[128,128], index: 1, kind: input, shape index: {}]   ;;  %s414_s2 = inlined_call_operand.vmem [shape: f32[1,128], index: 2, kind: input, shape index: {}]   ;;  %s415_s3 = inlined_call_operand.hbm [shape: f32[8,128], index: 3, kind: output, shape index: {}]  }
   0x1   :  { %9 = vsyncpa [#allocation7], 0 }
   0x2   :  { %10 = vsyncpa [#allocation5], 0  ;;  %s338_s12 = smov [#allocation3]   ;;  %s339_s14 = smov [#allocation6]  }
   0x3   :  { %s17_s13 = sshll.u32 %s338_s12, 4  ;;  %s26_s15 = sshll.u32 %s339_s14, 4  ;;  %s18_s13 = int_to_ptr.vmem [resolvable:$true] %s17_s13  ;;  %s366_s15 = int_to_ptr.vmem [resolvable:$true] %s26_s15 }
   0x4   :  { %s266_s18 = scalar_lea.hbm %s412_s0, 128 }
   0x5   :  { %p267_p0 = scmp.ne.s32.totalorder %s412_s0, %s266_s18  ;;  %p270_p1 = scmp.lt.u32.totalorder %s266_s18, %s412_s0 }
   0x7   :  { %p272_p2 = pnand %p270_p1, %p267_p0 }
   0x9   :  { %275 = shalt.err (!%p272_p2)
}
   0xa   :  { %s276_s23 = scalar_lea.vmem %s18_s13, 128  ;;  %p281_p4 = scmp.lt.s32.totalorder %s18_s13, %s18_s13 }
   0xb   :  { %p277_p3 = scmp.ne.s32.totalorder %s18_s13, %s276_s23  ;;  %p282_p5 = scmp.lt.s32.totalorder %s276_s23, %s276_s23 }
   0xd   :  { %p283_p6 = por %p282_p5, %p281_p4 }
   0xf   :  { %p284_p7 = pnand %p283_p6, %p277_p3 }
  0x11   :  { %287 = shalt.err (!%p284_p7)
}
  0x12   :  { %20 = dma.hbm_to_vmem [thread:$0]  %s412_s0, 128, %s18_s13, [#allocation4]  }
  0x13   :  { %s288_s28 = scalar_lea.hbm %s413_s1, 2048 }
  0x14   :  { %p289_p8 = scmp.ne.s32.totalorder %s413_s1, %s288_s28  ;;  %p292_p9 = scmp.lt.u32.totalorder %s288_s28, %s413_s1 }
  0x16   :  { %p294_p10 = pnand %p292_p9, %p289_p8 }
  0x18   :  { %297 = shalt.err (!%p294_p10)
}
  0x19   :  { %s298_s6 = scalar_lea.vmem %s366_s15, 2048  ;;  %p303_p12 = scmp.lt.s32.totalorder %s366_s15, %s366_s15 }
  0x1a   :  { %p299_p11 = scmp.ne.s32.totalorder %s366_s15, %s298_s6  ;;  %p304_p13 = scmp.lt.s32.totalorder %s298_s6, %s298_s6 }
  0x1c   :  { %p305_p0 = por %p304_p13, %p303_p12 }
  0x1e   :  { %p306_p1 = pnand %p305_p0, %p299_p11 }
  0x20   :  { %309 = shalt.err (!%p306_p1)
}
  0x21   :  { %s340_s0 = smov 128   ;;  %s341_s7 = smov 8  }
  0x22   :  { %32 = dma.hbm_to_vmem [thread:$0]  %s413_s1, 2048, %s366_s15, [#allocation7], %s340_s0, %s340_s0, %s341_s7  }
  0x23   :  { %332 = dma.done.wait [#allocation4], 128  }
  0x24   :  { %333 = vsyncadd [#allocation4], 4294967168 }
  0x25   :  { %334 = dma.done.wait [#allocation7], 2048  }
  0x26   :  { %335 = vsyncadd [#allocation7], 4294965248  ;;  %v342_v0 = vmov 0.0|0.0   ;;  %vm343_vm0 = vmmov 0   ;;  %v344_v1 = vmov 0.0   ;;  %v46_v2 = vld [vmem:[#allocation6] sm:$0xff] }
  0x27   :  { %234 = vmatprep.subr.bf16.mxu0 %v342_v0  ;;  %231 = vmatprep.mubr.msk.f32.mxu0 %vm343_vm0, %v344_v1  ;;  %v47_v3 = vld [vmem:[#allocation6 + $0x8] sm:$0xff]  ;;  %v62_v4 = vmax.f32 %v46_v2, 0.0  ;;  %v48_v6 = vld [vmem:[#allocation6 + $0x10] sm:$0xff]  ;;  %v49_v7 = vld [vmem:[#allocation6 + $0x18] sm:$0xff]  ;;  %s345_s11 = smov [#allocation8]  }
  0x28   :  { %v63_v5 = vmax.f32 %v47_v3, 0.0  ;;  %v64_v9 = vmax.f32 %v48_v6, 0.0  ;;  %v65_v10 = vmax.f32 %v49_v7, 0.0  ;;  %v50_v12 = vld [vmem:[#allocation6 + $0x20] sm:$0xff]  ;;  %v51_v13 = vld [vmem:[#allocation6 + $0x28] sm:$0xff]  ;;  %v52_v17 = vld [vmem:[#allocation6 + $0x30] sm:$0xff] }
  0x29   :  { %v66_v14 = vmax.f32 %v50_v12, 0.0  ;;  %v67_v15 = vmax.f32 %v51_v13, 0.0  ;;  %v53_v18 = vld [vmem:[#allocation6 + $0x38] sm:$0xff]  ;;  %v68_v19 = vmax.f32 %v52_v17, 0.0  ;;  %v54_v22 = vld [vmem:[#allocation6 + $0x40] sm:$0xff]  ;;  %v55_v23 = vld [vmem:[#allocation6 + $0x48] sm:$0xff] }
  0x2a   :  { %v235_v8 = vpack.c.bf16 %v63_v5, %v62_v4  ;;  %v238_v11 = vpack.c.bf16 %v65_v10, %v64_v9  ;;  %v69_v20 = vmax.f32 %v53_v18, 0.0  ;;  %v70_v24 = vmax.f32 %v54_v22, 0.0  ;;  %v56_v27 = vld [vmem:[#allocation6 + $0x50] sm:$0xff]  ;;  %v57_v28 = vld [vmem:[#allocation6 + $0x58] sm:$0xff]  ;;  %v58_v32 = vld [vmem:[#allocation6 + $0x60] sm:$0xff]  ;;  %s171_s12 = sshll.u32 %s345_s11, 4  ;;  %s172_s12 = int_to_ptr.vmem [resolvable:$true] %s171_s12 }
  0x2b   :  { %v241_v16 = vpack.c.bf16 %v67_v15, %v66_v14  ;;  %v71_v25 = vmax.f32 %v55_v23, 0.0  ;;  %v72_v29 = vmax.f32 %v56_v27, 0.0  ;;  %v73_v30 = vmax.f32 %v57_v28, 0.0  ;;  %v59_v33 = vld [vmem:[#allocation6 + $0x68] sm:$0xff]  ;;  %v60_v37 = vld [vmem:[#allocation6 + $0x70] sm:$0xff]  ;;  %v61_v38 = vld [vmem:[#allocation6 + $0x78] sm:$0xff]  ;;  %p315_p3 = scmp.lt.s32.totalorder %s172_s12, %s172_s12 }
  0x2c   :  { %236 = vmatpush3.bf16.xpose.msra.mxu0 %v235_v8  ;;  %v244_v21 = vpack.c.bf16 %v69_v20, %v68_v19  ;;  %v74_v34 = vmax.f32 %v58_v32, 0.0  ;;  %v75_v35 = vmax.f32 %v59_v33, 0.0  ;;  %v76_v39 = vmax.f32 %v60_v37, 0.0  ;;  %v79_v42 = vld [vmem:[#allocation3] sm:$0xff]  ;;  %s310_s13 = scalar_lea.vmem %s172_s12, 128 }
  0x2d   :  { %237 = vmatprep.subr.bf16.mxu0 %v342_v0  ;;  %v247_v26 = vpack.c.bf16 %v71_v25, %v70_v24  ;;  %v250_v31 = vpack.c.bf16 %v73_v30, %v72_v29  ;;  %v77_v40 = vmax.f32 %v61_v38, 0.0  ;;  %v181_v43 = vld [vmem:[%s414_s2] ss:$0 sm:$0xff]  ;;  %p311_p2 = scmp.ne.s32.totalorder %s172_s12, %s310_s13  ;;  %p316_p4 = scmp.lt.s32.totalorder %s310_s13, %s310_s13 }
  0x2e   :  { %v253_v36 = vpack.c.bf16 %v75_v35, %v74_v34 }
  0x2f   :  { %v256_v41 = vpack.c.bf16 %v77_v40, %v76_v39  ;;  %p317_p5 = por %p316_p4, %p315_p3 }
  0x31   :  { %p318_p6 = pnand %p317_p5, %p311_p2 }
  0x34   :  { %239 = vmatpush3.bf16.xpose.msra.mxu0 %v238_v11 }
  0x35   :  { %240 = vmatprep.subr.bf16.mxu0 %v342_v0 }
  0x3c   :  { %242 = vmatpush3.bf16.xpose.msra.mxu0 %v241_v16 }
  0x3d   :  { %243 = vmatprep.subr.bf16.mxu0 %v342_v0 }
  0x44   :  { %245 = vmatpush3.bf16.xpose.msra.mxu0 %v244_v21 }
  0x45   :  { %246 = vmatprep.subr.bf16.mxu0 %v342_v0 }
  0x4c   :  { %248 = vmatpush3.bf16.xpose.msra.mxu0 %v247_v26 }
  0x4d   :  { %249 = vmatprep.subr.bf16.mxu0 %v342_v0 }
  0x54   :  { %251 = vmatpush3.bf16.xpose.msra.mxu0 %v250_v31 }
  0x55   :  { %252 = vmatprep.subr.bf16.mxu0 %v342_v0 }
  0x5c   :  { %254 = vmatpush3.bf16.xpose.msra.mxu0 %v253_v36 }
  0x5d   :  { %255 = vmatprep.subr.bf16.mxu0 %v342_v0 }
  0x64   :  { %257 = vmatpush3.bf16.xpose.msra.mxu0 %v256_v41 }
  0x6b   :  { %232 = vmatmul.mubr.f32.vlgmr.msra.gmra.mrb[0].mxu0 %v79_v42 }
 0x13e   :  { %v146_v44 = vpop.f32.mrb[0].mxu0 }
 0x13f   :  { %v163_v45 = vadd.f32 %v181_v43, %v146_v44  ;;  %v233_v46 = vpop.f32.mrb[1].mxu0 }
 0x141   :  { %164 = vst [vmem:[#allocation8] sm:$0xff] %v163_v45 }
 0x142   :  { %321 = shalt.err (!%p318_p6)
}
 0x143   :  { %s322_s16 = scalar_lea.hbm %s415_s3, 128 }
 0x144   :  { %p323_p7 = scmp.ne.s32.totalorder %s415_s3, %s322_s16  ;;  %p326_p8 = scmp.lt.u32.totalorder %s322_s16, %s415_s3 }
 0x146   :  { %p328_p9 = pnand %p326_p8, %p323_p7 }
 0x148   :  { %331 = shalt.err (!%p328_p9)
}
 0x149   :  { %174 = dma.vmem_to_hbm [thread:$0]  %s172_s12, 128, %s415_s3, [#allocation5]  }
 0x14a   :  { %336 = dma.done.wait [#allocation5], 128  }
 0x14b   :  { %337 = vsyncadd [#allocation5], 4294967168 }
 0x14c   :  { %178 = vsyncpa [#allocation4], 1 }
 0x14d   :  { %179 = vsyncpa [#allocation7], 1 }
 0x14e   :  { %180 = vsyncpa [#allocation5], 1 }

</bundles_post_ra>
